<compile_context>
chip_gen: v7x
topology: tpu7x:2x2x1
jax: 0.10.0
libtpu: 0.0.40
codegen_flags: <defaults>
</compile_context>

<pallas_src>
import jax
import jax.numpy as jnp
from jax.experimental import pallas as pl
from jax.experimental.pallas import tpu as pltpu


def link_pred_kernel(a_ref, x_ref, w1_ref, b1_ref, w2_ref, b2_ref, idx_ref, out_ref):
    a = a_ref[...]                                                    # (Np, Np) bf16

    # GCN layer 1:  H1 = relu((A_hat @ X) @ W1 + b1)
    # (A@X first: K=F=16 < hidden=32, so the 128x128 propagation matmul does half the work.)
    ax = jnp.dot(a, x_ref[...], preferred_element_type=jnp.float32)   # (Np, F)  f32
    h1 = jnp.dot(ax.astype(jnp.bfloat16), w1_ref[...],
                 preferred_element_type=jnp.float32) + b1_ref[...]    # (Np, H)  f32
    h1 = jnp.maximum(h1, 0.0)                                         # ReLU on VPU (f32)

    # GCN layer 2:  H2 = A_hat @ (H1 @ W2) + b2   (H@W first: embed=16 < hidden=32)
    hw = jnp.dot(h1.astype(jnp.bfloat16), w2_ref[...],
                 preferred_element_type=jnp.float32)                  # (Np, E)  f32
    h2 = jnp.dot(a, hw.astype(jnp.bfloat16),
                 preferred_element_type=jnp.float32) + b2_ref[...]    # (Np, E)  f32

    # Edge-pair gather, transposed + stacked:
    #   onehot_t[n, p] = (idx[p] == n), idx = [i_nodes | j_nodes]  -> (Np, 2*Pp) built in-kernel
    #   g_t = H2^T @ onehot_t                                       -> (E, 2*Pp), one MXU matmul
    n_pad = a_ref.shape[0]
    two_p = idx_ref.shape[1]
    p_pad = two_p // 2
    node_iota = jax.lax.broadcasted_iota(jnp.int32, (n_pad, two_p), 0)
    onehot_t = (node_iota == idx_ref[...]).astype(jnp.bfloat16)
    g_t = jax.lax.dot_general(
        h2.astype(jnp.bfloat16), onehot_t,
        dimension_numbers=(((0,), (0,)), ((), ())),                   # contract over node axis
        preferred_element_type=jnp.float32)                           # (E, 2*Pp) f32

    ei = g_t[:, :p_pad]                                               # (E, Pp)
    ej = g_t[:, p_pad:]                                               # (E, Pp)
    scores = jnp.sum(ei * ej, axis=0, keepdims=True)                  # (1, Pp)  lane-dense
    out_ref[...] = jax.nn.sigmoid(scores)                             # f32 sigmoid on EUP


def build_normalized_adjacency(edge_index, num_nodes):
    """Dense A_hat = D^{-1/2} (A + I) D^{-1/2}, A[target, source] (PyG gcn_norm convention)."""
    src = edge_index[0]
    dst = edge_index[1]
    a = jnp.zeros((num_nodes, num_nodes), jnp.float32)
    a = a.at[dst, src].add(1.0)                          # message: source -> target
    a = a + jnp.eye(num_nodes, dtype=jnp.float32)        # self-loops
    deg = jnp.sum(a, axis=1)                             # per-node degree (incl. self-loop)
    dinv = 1.0 / jnp.sqrt(deg)
    return a * dinv[:, None] * dinv[None, :]


def _round_up(v, m):
    return ((v + m - 1) // m) * m


def _pad_2d(arr, rows, cols):
    return jnp.pad(arr, ((0, rows - arr.shape[0]), (0, cols - arr.shape[1])))


def link_prediction_forward(x, a_hat, edge_pairs, params):
    """x: (N, F) f32, a_hat: (N, N) f32 precomputed, edge_pairs: (P, 2) int32."""
    num_nodes = x.shape[0]
    num_pairs = edge_pairs.shape[0]
    n_pad = _round_up(max(num_nodes, 128), 128)
    p_pad = _round_up(max(num_pairs, 128), 128)

    # Zero-pad node dimension; cast MXU operands to bf16.
    a_p = _pad_2d(a_hat.astype(jnp.float32), n_pad, n_pad).astype(jnp.bfloat16)
    x_p = jnp.pad(x.astype(jnp.float32), ((0, n_pad - num_nodes), (0, 0))).astype(jnp.bfloat16)

    w1, b1, w2, b2 = params
    w1 = w1.astype(jnp.bfloat16)
    w2 = w2.astype(jnp.bfloat16)
    b1 = b1.reshape(1, -1).astype(jnp.float32)
    b2 = b2.reshape(1, -1).astype(jnp.float32)

    # Stacked endpoint indices, lane-dense (1, 2*Ppad) int32 (padded entries -> node 0, sliced off).
    i_idx = jnp.pad(edge_pairs[:, 0].astype(jnp.int32), (0, p_pad - num_pairs))
    j_idx = jnp.pad(edge_pairs[:, 1].astype(jnp.int32), (0, p_pad - num_pairs))
    idx = jnp.concatenate([i_idx, j_idx]).reshape(1, 2 * p_pad)

    vmem = pl.BlockSpec(memory_space=pltpu.MemorySpace.VMEM)
    out = pl.pallas_call(
        link_pred_kernel,
        out_shape=jax.ShapeDtypeStruct((1, p_pad), jnp.float32),
        in_specs=[vmem] * 7,
        out_specs=vmem,
    )(a_p, x_p, w1, b1, w2, b2, idx)
    return out[0, :num_pairs]


def link_prediction_reference(x, a_hat, edge_pairs, params):
    """Pure-JAX f32 reference of the PyTorch forward (for correctness check)."""
    w1, b1, w2, b2 = params
    h1 = jnp.maximum(a_hat @ (x @ w1) + b1, 0.0)
    h2 = a_hat @ (h1 @ w2) + b2
    ei = h2[edge_pairs[:, 0]]
    ej = h2[edge_pairs[:, 1]]
    return jax.nn.sigmoid(jnp.sum(ei * ej, axis=1))


def init_params(key, num_features, hidden_channels, embedding_dim):
    k1, k2 = jax.random.split(key)
    # Glorot-style init for GCNConv weights; zero biases (PyG default).
    s1 = jnp.sqrt(6.0 / (num_features + hidden_channels))
    s2 = jnp.sqrt(6.0 / (hidden_channels + embedding_dim))
    w1 = jax.random.uniform(k1, (num_features, hidden_channels), jnp.float32, -s1, s1)
    w2 = jax.random.uniform(k2, (hidden_channels, embedding_dim), jnp.float32, -s2, s2)
    b1 = jnp.zeros((hidden_channels,), jnp.float32)
    b2 = jnp.zeros((embedding_dim,), jnp.float32)
    return (w1, b1, w2, b2)


if __name__ == "__main__":
    num_nodes = 100
    num_edges = 500
    num_train = 200
    num_features = 16
    hidden_channels = 32
    embedding_dim = 16

    key = jax.random.PRNGKey(0)
    k_x, k_e, k_p, k_w = jax.random.split(key, 4)

    x = jax.random.normal(k_x, (num_nodes, num_features), jnp.float32)
    edge_index = jax.random.randint(k_e, (2, num_edges), 0, num_nodes, jnp.int32)
    edge_pairs = jax.random.randint(k_p, (num_train, 2), 0, num_nodes, jnp.int32)

    params = init_params(k_w, num_features, hidden_channels, embedding_dim)

    # Precompute the normalized adjacency once, outside the measured forward path.
    a_hat = jax.block_until_ready(build_normalized_adjacency(edge_index, num_nodes))

    fwd = jax.jit(link_prediction_forward)
    probs = fwd(x, a_hat, edge_pairs, params)
    probs = jax.block_until_ready(probs)

    assert probs.shape == (num_train,)
    assert bool(jnp.all(jnp.isfinite(probs)))
    assert bool(jnp.all((probs >= 0.0) & (probs <= 1.0)))

    # Correctness vs. pure-JAX f32 reference (generous tolerance: kernel matmuls are bf16).
    ref = link_prediction_reference(x, a_hat, edge_pairs, params)
    assert bool(jnp.max(jnp.abs(probs - ref)) < 5e-2)

    print("KERNEL_OK")
</pallas_src>

<mosaic_0001>
module attributes {stable_mosaic.version = 11 : i64} {
  func.func @link_pred_kernel(%arg0: memref<128x128xbf16, #tpu.memory_space<vmem>>, %arg1: memref<128x16xbf16, #tpu.memory_space<vmem>>, %arg2: memref<16x32xbf16, #tpu.memory_space<vmem>>, %arg3: memref<1x32xf32, #tpu.memory_space<vmem>>, %arg4: memref<32x16xbf16, #tpu.memory_space<vmem>>, %arg5: memref<1x16xf32, #tpu.memory_space<vmem>>, %arg6: memref<1x512xi32, #tpu.memory_space<vmem>>, %arg7: memref<1x256xf32, #tpu.memory_space<vmem>>) attributes {dimension_semantics = [], scalar_prefetch = 0 : i64, scratch_operands = 0 : i64, tpu.core_type = #tpu.core_type<tc>} {
    %c0 = arith.constant 0 : index
    %c0_0 = arith.constant 0 : index
    %0 = vector.load %arg0[%c0, %c0_0] : memref<128x128xbf16, #tpu.memory_space<vmem>>, vector<128x128xbf16>
    %c0_1 = arith.constant 0 : index
    %c0_2 = arith.constant 0 : index
    %1 = vector.load %arg1[%c0_1, %c0_2] : memref<128x16xbf16, #tpu.memory_space<vmem>>, vector<128x16xbf16>
    %cst = arith.constant dense<0.000000e+00> : vector<128x16xf32>
    %2 = tpu.matmul %0, %1, %cst {dimension_numbers = #tpu.dot_dimension_numbers<[1], [0], [0], [1], [0, 0, 1, 1], [], []>} : vector<128x128xbf16>, vector<128x16xbf16>, vector<128x16xf32> -> vector<128x16xf32>
    %3 = arith.truncf %2 : vector<128x16xf32> to vector<128x16xbf16>
    %c0_3 = arith.constant 0 : index
    %c0_4 = arith.constant 0 : index
    %4 = vector.load %arg2[%c0_3, %c0_4] : memref<16x32xbf16, #tpu.memory_space<vmem>>, vector<16x32xbf16>
    %cst_5 = arith.constant dense<0.000000e+00> : vector<128x32xf32>
    %5 = tpu.matmul %3, %4, %cst_5 {dimension_numbers = #tpu.dot_dimension_numbers<[1], [0], [0], [1], [0, 0, 1, 1], [], []>} : vector<128x16xbf16>, vector<16x32xbf16>, vector<128x32xf32> -> vector<128x32xf32>
    %c0_6 = arith.constant 0 : index
    %c0_7 = arith.constant 0 : index
    %6 = vector.load %arg3[%c0_6, %c0_7] : memref<1x32xf32, #tpu.memory_space<vmem>>, vector<1x32xf32>
    %7 = vector.broadcast %6 : vector<1x32xf32> to vector<128x32xf32>
    %8 = arith.addf %5, %7 : vector<128x32xf32>
    %cst_8 = arith.constant 0.000000e+00 : f32
    %9 = vector.broadcast %cst_8 : f32 to vector<128x32xf32>
    %10 = arith.maximumf %8, %9 : vector<128x32xf32>
    %11 = arith.truncf %10 : vector<128x32xf32> to vector<128x32xbf16>
    %c0_9 = arith.constant 0 : index
    %c0_10 = arith.constant 0 : index
    %12 = vector.load %arg4[%c0_9, %c0_10] : memref<32x16xbf16, #tpu.memory_space<vmem>>, vector<32x16xbf16>
    %cst_11 = arith.constant dense<0.000000e+00> : vector<128x16xf32>
    %13 = tpu.matmul %11, %12, %cst_11 {dimension_numbers = #tpu.dot_dimension_numbers<[1], [0], [0], [1], [0, 0, 1, 1], [], []>} : vector<128x32xbf16>, vector<32x16xbf16>, vector<128x16xf32> -> vector<128x16xf32>
    %14 = arith.truncf %13 : vector<128x16xf32> to vector<128x16xbf16>
    %cst_12 = arith.constant dense<0.000000e+00> : vector<128x16xf32>
    %15 = tpu.matmul %0, %14, %cst_12 {dimension_numbers = #tpu.dot_dimension_numbers<[1], [0], [0], [1], [0, 0, 1, 1], [], []>} : vector<128x128xbf16>, vector<128x16xbf16>, vector<128x16xf32> -> vector<128x16xf32>
    %c0_13 = arith.constant 0 : index
    %c0_14 = arith.constant 0 : index
    %16 = vector.load %arg5[%c0_13, %c0_14] : memref<1x16xf32, #tpu.memory_space<vmem>>, vector<1x16xf32>
    %17 = vector.broadcast %16 : vector<1x16xf32> to vector<128x16xf32>
    %18 = arith.addf %15, %17 : vector<128x16xf32>
    %19 = tpu.iota {dimensions = array<i32: 0>} : vector<128x512xi32>
    %c0_15 = arith.constant 0 : index
    %c0_16 = arith.constant 0 : index
    %20 = vector.load %arg6[%c0_15, %c0_16] : memref<1x512xi32, #tpu.memory_space<vmem>>, vector<1x512xi32>
    %21 = vector.broadcast %20 : vector<1x512xi32> to vector<128x512xi32>
    %22 = arith.cmpi eq, %19, %21 : vector<128x512xi32>
    %23 = arith.extui %22 : vector<128x512xi1> to vector<128x512xi32>
    %24 = arith.sitofp %23 : vector<128x512xi32> to vector<128x512xf32>
    %25 = arith.truncf %24 : vector<128x512xf32> to vector<128x512xbf16>
    %26 = arith.truncf %18 : vector<128x16xf32> to vector<128x16xbf16>
    %cst_17 = arith.constant dense<0.000000e+00> : vector<16x512xf32>
    %27 = tpu.matmul %26, %25, %cst_17 {dimension_numbers = #tpu.dot_dimension_numbers<[0], [0], [1], [1], [0, 1, 1, 1], [], []>} : vector<128x16xbf16>, vector<128x512xbf16>, vector<16x512xf32> -> vector<16x512xf32>
    %28 = vector.extract_strided_slice %27 {offsets = [0, 0], sizes = [16, 256], strides = [1, 1]} : vector<16x512xf32> to vector<16x256xf32>
    %29 = vector.extract_strided_slice %27 {offsets = [0, 256], sizes = [16, 256], strides = [1, 1]} : vector<16x512xf32> to vector<16x256xf32>
    %30 = arith.mulf %28, %29 : vector<16x256xf32>
    %cst_18 = arith.constant dense<0.000000e+00> : vector<256xf32>
    %31 = vector.multi_reduction <add>, %30, %cst_18 [0] : vector<16x256xf32> to vector<256xf32>
    %32 = vector.shape_cast %31 : vector<256xf32> to vector<1x256xf32>
    %33 = arith.negf %32 : vector<1x256xf32>
    %34 = math.exp %33 : vector<1x256xf32>
    %cst_19 = arith.constant 1.000000e+00 : f32
    %35 = vector.broadcast %cst_19 : f32 to vector<1x256xf32>
    %36 = arith.addf %35, %34 : vector<1x256xf32>
    %37 = arith.divf %35, %36 : vector<1x256xf32>
    %c0_20 = arith.constant 0 : index
    %c0_21 = arith.constant 0 : index
    %38 = vector.load %arg7[%c0_20, %c0_21] : memref<1x256xf32, #tpu.memory_space<vmem>>, vector<1x256xf32>
    tpu.vector_store %arg7[%c0_20, %c0_21], %37 {strides = array<i32>} : memref<1x256xf32, #tpu.memory_space<vmem>>, vector<1x256xf32>,
    return
  }
}

</mosaic_0001>

<bundles_post_ra>
// kernel: link_prediction_forward.1
= control target key start
LH: loop header
LB: loop body
LE: loop exit
PB: predicated region body
PF: predicated region fallthrough
CT: control target
= control target key end

     0   :  { %s1780_s0 = inlined_call_operand.vmem [shape: bf16[128,128], index: 0, kind: input, shape index: {}]   ;;  %s1781_s1 = inlined_call_operand.vmem [shape: bf16[128,16], index: 1, kind: input, shape index: {}]   ;;  %s1782_s2 = inlined_call_operand.vmem [shape: bf16[16,32], index: 2, kind: input, shape index: {}]   ;;  %s1783_s3 = inlined_call_operand.vmem [shape: f32[1,32], index: 3, kind: input, shape index: {}]   ;;  %s1784_s4 = inlined_call_operand.vmem [shape: bf16[32,16], index: 4, kind: input, shape index: {}]   ;;  %s1785_s5 = inlined_call_operand.vmem [shape: f32[1,16], index: 5, kind: input, shape index: {}]   ;;  %s1786_s6 = inlined_call_operand.vmem [shape: s32[1,512], index: 6, kind: input, shape index: {}]   ;;  %s1787_s7 = inlined_call_operand.hbm [shape: f32[1,256], index: 7, kind: output, shape index: {}]  }
   0x1   :  { %v1431_v0 = vld [vmem:[%s1781_s1] sm:$0xff]   ;;  %v1432_v1 = vld [vmem:[%s1781_s1 + $0x8] sm:$0xff]   ;;  %v1433_v2 = vld [vmem:[%s1781_s1 + $0x10] sm:$0xff]  }
   0x2   :  { %1325 = vmatprep.subr.bf16.mxu0 %v1431_v0  ;;  %v1434_v3 = vld [vmem:[%s1781_s1 + $0x18] sm:$0xff]   ;;  %v1439_v4 = vld [vmem:[%s1780_s0] sm:$0xff]   ;;  %v1436_v6 = vld [vmem:[%s1781_s1 + $0x28] sm:$0xff]  }
   0x3   :  { %1326 = vmatpush3.bf16.msra.mxu0 %v1431_v0  ;;  %1341 = vmatprep.mubr.bf16.mxu0 %v1439_v4  ;;  %v1435_v5 = vld [vmem:[%s1781_s1 + $0x20] sm:$0xff]  }
   0x4   :  { %1327 = vmatprep.subr.bf16.mxu0 %v1432_v1 }
   0x7   :  { %1328 = vmatpush3.bf16.msra.mxu0 %v1432_v1 }
   0x8   :  { %1329 = vmatprep.subr.bf16.mxu0 %v1433_v2 }
   0xb   :  { %1330 = vmatpush3.bf16.msra.mxu0 %v1433_v2 }
   0xc   :  { %1331 = vmatprep.subr.bf16.mxu0 %v1434_v3 }
   0xf   :  { %1332 = vmatpush3.bf16.msra.mxu0 %v1434_v3 }
  0x10   :  { %1333 = vmatprep.subr.bf16.mxu0 %v1435_v5 }
  0x11   :  { %12 = vsyncpa [#allocation3], 0  ;;  %v1437_v7 = vld [vmem:[%s1781_s1 + $0x30] sm:$0xff]   ;;  %v1438_v8 = vld [vmem:[%s1781_s1 + $0x38] sm:$0xff]   ;;  %vm276_vm0 = vcmask 130048   ;;  %vm438_vm1 = vcmask 261120  }
  0x12   :  { %v1556_v9 = vld [vmem:[%s1780_s0 + $0x8] sm:$0xff]   ;;  %v1561_v10 = vld [vmem:[%s1780_s0 + $0x10] sm:$0xff]   ;;  %v1568_v11 = vld [vmem:[%s1780_s0 + $0x18] sm:$0xff]  }
  0x13   :  { %1334 = vmatpush3.bf16.msra.mxu0 %v1435_v5  ;;  %v1573_v12 = vld [vmem:[%s1780_s0 + $0x20] sm:$0xff]   ;;  %v1580_v13 = vld [vmem:[%s1780_s0 + $0x28] sm:$0xff]   ;;  %v1585_v14 = vld [vmem:[%s1780_s0 + $0x30] sm:$0xff]  }
  0x14   :  { %1335 = vmatprep.subr.bf16.mxu0 %v1436_v6  ;;  %v1592_v15 = vld [vmem:[%s1780_s0 + $0x38] sm:$0xff]   ;;  %v1447_v16 = vld [vmem:[%s1782_s2] sm:$0xff]   ;;  %v1449_v24 = vld [vmem:[%s1784_s4 + $0x8] sm:$0xff]  }
  0x15   :  { %1357 = vmatprep.subr.bf16.mxu1 %v1447_v16  ;;  %v1448_v17 = vld [vmem:[%s1784_s4] sm:$0xff]  }
  0x16   :  { %1358 = vmatpush3.bf16.msra.mxu1 %v1447_v16  ;;  %v1123_v43 = vld [vmem:[%s1783_s3] ss:$0 sm:$0xff] }
  0x17   :  { %1336 = vmatpush3.bf16.msra.mxu0 %v1436_v6  ;;  %1375 = vmatprep.subr.bf16.mxu1 %v1448_v17 }
  0x18   :  { %1337 = vmatprep.subr.bf16.mxu0 %v1437_v7 }
  0x1b   :  { %1338 = vmatpush3.bf16.msra.mxu0 %v1437_v7 }
  0x1c   :  { %1339 = vmatprep.subr.bf16.mxu0 %v1438_v8 }
  0x1f   :  { %1340 = vmatpush3.bf16.msra.mxu0 %v1438_v8 }
  0x22   :  { %1342 = vmatmul.mubr.bf16.vlgmr.msra.gmra.mrb[0].mxu0 %v1556_v9 }
  0x23   :  { %1345 = vmatprep.mubr.bf16.mxu0 %v1561_v10 }
  0x2a   :  { %1346 = vmatmul.mubr.bf16.gmra.mrb[4].mxu0 %v1568_v11 }
  0x2b   :  { %1349 = vmatprep.mubr.bf16.mxu0 %v1573_v12 }
  0x32   :  { %1350 = vmatmul.mubr.bf16.gmra.mrb[8].mxu0 %v1580_v13 }
  0x33   :  { %1353 = vmatprep.mubr.bf16.mxu0 %v1585_v14 }
  0x3a   :  { %1354 = vmatmul.mubr.bf16.gmra.mrb[12].mxu0 %v1592_v15 }
  0x3b   :  { %1411 = vmatprep.mubr.bf16.mxu0 %v1439_v4 }
  0xf5   :  { %v1343_v18 = vpop.f32.mrb[0].mxu0 }
  0xf6   :  { %v190_v19 = vpop.f32.mrb[1].mxu0 }
  0xf7   :  { %v1344_v20 = vpop.f32.mrb[2].mxu0 }
  0xf8   :  { %v254_v21 = vpack.c.bf16 %v1344_v20, %v1343_v18  ;;  %v193_v22 = vpop.f32.mrb[3].mxu0 }
  0xf9   :  { %v253_v23 = vpack.c.bf16 %v193_v22, %v190_v19 }
  0xfb   :  { %1359 = vmatprep.mubr.msk.bf16.mxu1 %vm276_vm0, %v253_v23 }
  0xfc   :  { %1360 = vmatmul.mubr.msk.bf16.vlgmr.msra.gmra.mrb[0].mxu1 %vm276_vm0, %v254_v21 }
  0xfd   :  { %v1347_v25 = vpop.f32.mrb[4].mxu0  ;;  %1376 = vmatpush3.bf16.msra.mxu1 %v1448_v17 }
  0xfe   :  { %v206_v26 = vpop.f32.mrb[5].mxu0  ;;  %1377 = vmatprep.subr.bf16.mxu1 %v1449_v24 }
  0xff   :  { %v1348_v27 = vpop.f32.mrb[6].mxu0 }
 0x100   :  { %v256_v28 = vpack.c.bf16 %v1348_v27, %v1347_v25  ;;  %v209_v29 = vpop.f32.mrb[7].mxu0 }
 0x101   :  { %v255_v30 = vpack.c.bf16 %v209_v29, %v206_v26  ;;  %1378 = vmatpush3.bf16.msra.mxu1 %v1449_v24 }
 0x103   :  { %1363 = vmatprep.mubr.msk.bf16.mxu1 %vm276_vm0, %v255_v30 }
 0x104   :  { %1364 = vmatmul.mubr.msk.bf16.gmra.mrb[4].mxu1 %vm276_vm0, %v256_v28 }
 0x105   :  { %v1351_v31 = vpop.f32.mrb[8].mxu0 }
 0x106   :  { %v222_v32 = vpop.f32.mrb[9].mxu0 }
 0x107   :  { %v1352_v33 = vpop.f32.mrb[10].mxu0 }
 0x108   :  { %v258_v34 = vpack.c.bf16 %v1352_v33, %v1351_v31  ;;  %v225_v35 = vpop.f32.mrb[11].mxu0 }
 0x109   :  { %v257_v36 = vpack.c.bf16 %v225_v35, %v222_v32 }
 0x10b   :  { %1367 = vmatprep.mubr.msk.bf16.mxu1 %vm276_vm0, %v257_v36 }
 0x10c   :  { %1368 = vmatmul.mubr.msk.bf16.gmra.mrb[8].mxu1 %vm276_vm0, %v258_v34 }
 0x10d   :  { %v1355_v37 = vpop.f32.mrb[12].mxu0 }
 0x10e   :  { %v238_v38 = vpop.f32.mrb[13].mxu0 }
 0x10f   :  { %v1356_v39 = vpop.f32.mrb[14].mxu0 }
 0x110   :  { %v260_v40 = vpack.c.bf16 %v1356_v39, %v1355_v37  ;;  %v241_v41 = vpop.f32.mrb[15].mxu0 }
 0x111   :  { %v259_v42 = vpack.c.bf16 %v241_v41, %v238_v38 }
 0x113   :  { %1371 = vmatprep.mubr.msk.bf16.mxu1 %vm276_vm0, %v259_v42 }
 0x114   :  { %1372 = vmatmul.mubr.msk.bf16.gmra.mrb[12].mxu1 %vm276_vm0, %v260_v40 }
 0x1cf   :  { %v1361_v44 = vpop.f32.mrb[0].mxu1 }
 0x1d0   :  { %v344_v45 = vadd.f32 %v1361_v44, %v1123_v43  ;;  %v335_v46 = vpop.f32.mrb[1].mxu1 }
 0x1d1   :  { %v336_v47 = vadd.f32 %v1123_v43, %v335_v46  ;;  %v1362_v48 = vpop.f32.mrb[2].mxu1 }
 0x1d2   :  { %v347_v49 = vadd.f32 %v1362_v48, %v1123_v43  ;;  %v338_v50 = vpop.f32.mrb[3].mxu1  ;;  %v400_v52 = vmax.f32 %v344_v45, 0.0 }
 0x1d3   :  { %v339_v51 = vadd.f32 %v1123_v43, %v338_v50  ;;  %v398_v54 = vmax.f32 %v336_v47, 0.0 }
 0x1d4   :  { %v401_v53 = vmax.f32 %v347_v49, 0.0 }
 0x1d5   :  { %v399_v55 = vmax.f32 %v339_v51, 0.0 }
 0x1d6   :  { %v415_v56 = vpack.c.bf16 %v401_v53, %v400_v52 }
 0x1d7   :  { %v414_v57 = vpack.c.bf16 %v399_v55, %v398_v54  ;;  %v1365_v58 = vpop.f32.mrb[4].mxu1 }
 0x1d8   :  { %v360_v59 = vadd.f32 %v1365_v58, %v1123_v43  ;;  %v351_v60 = vpop.f32.mrb[5].mxu1 }
 0x1d9   :  { %v352_v61 = vadd.f32 %v1123_v43, %v351_v60  ;;  %v1366_v62 = vpop.f32.mrb[6].mxu1  ;;  %1379 = vmatprep.mubr.msk.bf16.mxu1 %vm438_vm1, %v414_v57 }
 0x1da   :  { %v363_v63 = vadd.f32 %v1366_v62, %v1123_v43  ;;  %v354_v0 = vpop.f32.mrb[7].mxu1  ;;  %1380 = vmatmul.mubr.msk.bf16.vlgmr.msra.gmra.mrb[16].mxu1 %vm438_vm1, %v415_v56  ;;  %v404_v2 = vmax.f32 %v360_v59, 0.0 }
 0x1db   :  { %v355_v1 = vadd.f32 %v1123_v43, %v354_v0  ;;  %v402_v4 = vmax.f32 %v352_v61, 0.0 }
 0x1dc   :  { %v405_v3 = vmax.f32 %v363_v63, 0.0 }
 0x1dd   :  { %v403_v5 = vmax.f32 %v355_v1, 0.0 }
 0x1de   :  { %v417_v6 = vpack.c.bf16 %v405_v3, %v404_v2  ;;  %v672_v3 = vlaneseq }
 0x1df   :  { %v416_v7 = vpack.c.bf16 %v403_v5, %v402_v4  ;;  %v1369_v8 = vpop.f32.mrb[8].mxu1 }
 0x1e0   :  { %v376_v16 = vadd.f32 %v1369_v8, %v1123_v43  ;;  %v367_v17 = vpop.f32.mrb[9].mxu1  ;;  %v1631_v4 = vshrl.u32 %v672_v3, 7 }
 0x1e1   :  { %v368_v18 = vadd.f32 %v1123_v43, %v367_v17  ;;  %v1370_v19 = vpop.f32.mrb[10].mxu1  ;;  %1383 = vmatprep.mubr.msk.bf16.mxu1 %vm438_vm1, %v416_v7  ;;  %v1482_v17 = vmov 1.0|1.0  }
 0x1e2   :  { %v379_v20 = vadd.f32 %v1370_v19, %v1123_v43  ;;  %v370_v21 = vpop.f32.mrb[11].mxu1  ;;  %1384 = vmatmul.mubr.msk.bf16.gmra.mrb[20].mxu1 %vm438_vm1, %v417_v6  ;;  %v408_v23 = vmax.f32 %v376_v16, 0.0  ;;  %v676_v8 = vadd.s32 24, %v1631_v4  ;;  %v678_v19 = vadd.s32 40, %v1631_v4 }
 0x1e3   :  { %v371_v22 = vadd.f32 %v1123_v43, %v370_v21  ;;  %v406_v25 = vmax.f32 %v368_v18, 0.0  ;;  %v677_v18 = vadd.s32 32, %v1631_v4  ;;  %v680_v21 = vadd.s32 56, %v1631_v4 }
 0x1e4   :  { %v409_v24 = vmax.f32 %v379_v20, 0.0  ;;  %v679_v20 = vadd.s32 48, %v1631_v4 }
 0x1e5   :  { %v407_v26 = vmax.f32 %v371_v22, 0.0  ;;  %v681_v22 = vadd.s32 64, %v1631_v4 }
 0x1e6   :  { %v419_v27 = vpack.c.bf16 %v409_v24, %v408_v23  ;;  %v682_v23 = vadd.s32 72, %v1631_v4  ;;  %v683_v24 = vadd.s32 80, %v1631_v4 }
 0x1e7   :  { %v418_v28 = vpack.c.bf16 %v407_v26, %v406_v25  ;;  %v1373_v29 = vpop.f32.mrb[12].mxu1  ;;  %v684_v25 = vadd.s32 88, %v1631_v4  ;;  %v685_v26 = vadd.s32 96, %v1631_v4 }
 0x1e8   :  { %v392_v30 = vadd.f32 %v1373_v29, %v1123_v43  ;;  %v383_v31 = vpop.f32.mrb[13].mxu1  ;;  %v688_v29 = vadd.s32 120, %v1631_v4 }
 0x1e9   :  { %v384_v32 = vadd.f32 %v1123_v43, %v383_v31  ;;  %v1374_v33 = vpop.f32.mrb[14].mxu1  ;;  %1387 = vmatprep.mubr.msk.bf16.mxu1 %vm438_vm1, %v418_v28  ;;  %v687_v28 = vadd.s32 112, %v1631_v4 }
 0x1ea   :  { %v395_v34 = vadd.f32 %v1374_v33, %v1123_v43  ;;  %v386_v35 = vpop.f32.mrb[15].mxu1  ;;  %1388 = vmatmul.mubr.msk.bf16.gmra.mrb[24].mxu1 %vm438_vm1, %v419_v27  ;;  %v412_v37 = vmax.f32 %v392_v30, 0.0  ;;  %v686_v27 = vadd.s32 104, %v1631_v4  ;;  %v1483_v30 = vmov 0  }
 0x1eb   :  { %v387_v36 = vadd.f32 %v1123_v43, %v386_v35  ;;  %v410_v39 = vmax.f32 %v384_v32, 0.0  ;;  %v1143_v32 = vld [vmem:[%s1785_s5] ss:$0 sm:$0xff]  ;;  %s1485_s5 = smov [#allocation2]  }
 0x1ec   :  { %v413_v38 = vmax.f32 %v395_v34, 0.0  ;;  %s1099_s16 = sshll.u32 %s1485_s5, 4  ;;  %s1100_s16 = int_to_ptr.vmem [resolvable:$true] %s1099_s16 }
 0x1ed   :  { %v411_v40 = vmax.f32 %v387_v36, 0.0  ;;  %s1458_s17 = scalar_lea.vmem %s1100_s16, 32  ;;  %p1463_p1 = scmp.lt.s32.totalorder %s1100_s16, %s1100_s16 }
 0x1ee   :  { %v421_v41 = vpack.c.bf16 %v413_v38, %v412_v37  ;;  %p1459_p0 = scmp.ne.s32.totalorder %s1100_s16, %s1458_s17  ;;  %p1464_p2 = scmp.lt.s32.totalorder %s1458_s17, %s1458_s17 }
 0x1ef   :  { %v420_v42 = vpack.c.bf16 %v411_v40, %v410_v39 }
 0x1f0   :  { %p1465_p3 = por %p1464_p2, %p1463_p1 }
 0x1f1   :  { %1391 = vmatprep.mubr.msk.bf16.mxu1 %vm438_vm1, %v420_v42 }
 0x1f2   :  { %1392 = vmatmul.mubr.msk.bf16.gmra.mrb[28].mxu1 %vm438_vm1, %v421_v41  ;;  %p1466_p4 = pnand %p1465_p3, %p1459_p0 }
 0x1f3   :  { %986 = vmatprep.mubr.bf16.mxu1 %v1483_v30 }
 0x2ad   :  { %v1381_v44 = vpop.f32.mrb[16].mxu1 }
 0x2ae   :  { %v497_v45 = vpop.f32.mrb[17].mxu1 }
 0x2af   :  { %v1382_v46 = vpop.f32.mrb[18].mxu1 }
 0x2b0   :  { %v561_v47 = vpack.c.bf16 %v1382_v46, %v1381_v44  ;;  %v500_v48 = vpop.f32.mrb[19].mxu1 }
 0x2b1   :  { %v560_v49 = vpack.c.bf16 %v500_v48, %v497_v45 }
 0x2b3   :  { %1395 = vmatprep.subr.bf16.mxu0 %v560_v49 }
 0x2b4   :  { %1396 = vmatpush3.bf16.msra.mxu0 %v560_v49 }
 0x2b5   :  { %v1385_v50 = vpop.f32.mrb[20].mxu1  ;;  %1397 = vmatprep.subr.bf16.mxu0 %v561_v47 }
 0x2b6   :  { %v513_v43 = vpop.f32.mrb[21].mxu1 }
 0x2b7   :  { %v1386_v51 = vpop.f32.mrb[22].mxu1 }
 0x2b8   :  { %v563_v52 = vpack.c.bf16 %v1386_v51, %v1385_v50  ;;  %v516_v53 = vpop.f32.mrb[23].mxu1  ;;  %1398 = vmatpush3.bf16.msra.mxu0 %v561_v47 }
 0x2b9   :  { %v562_v54 = vpack.c.bf16 %v516_v53, %v513_v43 }
 0x2bb   :  { %1399 = vmatprep.subr.bf16.mxu0 %v562_v54 }
 0x2bc   :  { %1400 = vmatpush3.bf16.msra.mxu0 %v562_v54 }
 0x2bd   :  { %v1389_v55 = vpop.f32.mrb[24].mxu1  ;;  %1401 = vmatprep.subr.bf16.mxu0 %v563_v52 }
 0x2be   :  { %v529_v56 = vpop.f32.mrb[25].mxu1 }
 0x2bf   :  { %v1390_v57 = vpop.f32.mrb[26].mxu1 }
 0x2c0   :  { %v565_v58 = vpack.c.bf16 %v1390_v57, %v1389_v55  ;;  %v532_v59 = vpop.f32.mrb[27].mxu1  ;;  %1402 = vmatpush3.bf16.msra.mxu0 %v563_v52 }
 0x2c1   :  { %v564_v60 = vpack.c.bf16 %v532_v59, %v529_v56 }
 0x2c3   :  { %1403 = vmatprep.subr.bf16.mxu0 %v564_v60 }
 0x2c4   :  { %1404 = vmatpush3.bf16.msra.mxu0 %v564_v60 }
 0x2c5   :  { %v1393_v61 = vpop.f32.mrb[28].mxu1  ;;  %1405 = vmatprep.subr.bf16.mxu0 %v565_v58 }
 0x2c6   :  { %v545_v62 = vpop.f32.mrb[29].mxu1 }
 0x2c7   :  { %v1394_v63 = vpop.f32.mrb[30].mxu1 }
 0x2c8   :  { %v567_v0 = vpack.c.bf16 %v1394_v63, %v1393_v61  ;;  %v548_v1 = vpop.f32.mrb[31].mxu1  ;;  %1406 = vmatpush3.bf16.msra.mxu0 %v565_v58 }
 0x2c9   :  { %v566_v2 = vpack.c.bf16 %v548_v1, %v545_v62 }
 0x2cb   :  { %1407 = vmatprep.subr.bf16.mxu0 %v566_v2 }
 0x2cc   :  { %1408 = vmatpush3.bf16.msra.mxu0 %v566_v2 }
 0x2cd   :  { %1409 = vmatprep.subr.bf16.mxu0 %v567_v0 }
 0x2d0   :  { %1410 = vmatpush3.bf16.msra.mxu0 %v567_v0 }
 0x2d3   :  { %1412 = vmatmul.mubr.bf16.vlgmr.msra.gmra.mrb[16].mxu0 %v1556_v9  ;;  %v689_v9 = vld [vmem:[%s1786_s6] sm:$0xf] }
 0x2d4   :  { %1415 = vmatprep.mubr.bf16.mxu0 %v1561_v10  ;;  %v674_v10 = vadd.s32 8, %v1631_v4 }
 0x2db   :  { %1416 = vmatmul.mubr.bf16.gmra.mrb[20].mxu0 %v1568_v11  ;;  %v696_v11 = vsub.s32 1, %v1631_v4 }
 0x2dc   :  { %1419 = vmatprep.mubr.bf16.mxu0 %v1573_v12  ;;  %v704_v12 = vsub.s32 3, %v1631_v4 }
 0x2dd   :  { %v1642_v5 = vrot.slane %v689_v9, %v696_v11 }
 0x2de   :  { %v1644_v6 = vrot.slane %v689_v9, %v704_v12 }
 0x2df   :  { %vm707_vm2 = vcmp.eq.s32.totalorder %v1631_v4, %v1642_v5  ;;  %vm711_vm3 = vcmp.eq.s32.totalorder %v674_v10, %v1642_v5  ;;  %vm719_vm13 = vcmp.eq.s32.totalorder %v676_v8, %v1642_v5 }
 0x2e0   :  { %vm709_vm4 = vcmp.eq.s32.totalorder %v1631_v4, %v1644_v6  ;;  %vm713_vm5 = vcmp.eq.s32.totalorder %v674_v10, %v1644_v6  ;;  %vm1208_vm6 = vmpackc.low %vm711_vm3, %vm707_vm2  ;;  %vm721_vm0 = vcmp.eq.s32.totalorder %v676_v8, %v1644_v6 }
 0x2e1   :  { %1209 = vmatprep.subr.msk.bf16.mxu1 %vm1208_vm6, %v1482_v17  ;;  %vm1240_vm11 = vmpackc.low %vm713_vm5, %vm709_vm4 }
 0x2e2   :  { %1241 = vmatprep.subr.msk.bf16.mxu0 %vm1240_vm11, %v1482_v17  ;;  %vm727_vm11 = vcmp.eq.s32.totalorder %v678_v19, %v1642_v5 }
 0x2e3   :  { %1420 = vmatmul.mubr.bf16.gmra.mrb[24].mxu0 %v1580_v13  ;;  %v692_v13 = vsub.s32 0, %v1631_v4 }
 0x2e4   :  { %1423 = vmatprep.mubr.bf16.mxu0 %v1585_v14  ;;  %v700_v14 = vsub.s32 2, %v1631_v4 }
 0x2e5   :  { %v1646_v7 = vrot.slane %v689_v9, %v692_v13 }
 0x2e6   :  { %v1649_v16 = vrot.slane %v689_v9, %v700_v14 }
 0x2e7   :  { %vm706_vm7 = vcmp.eq.s32.totalorder %v1631_v4, %v1646_v7  ;;  %vm710_vm8 = vcmp.eq.s32.totalorder %v674_v10, %v1646_v7  ;;  %vm718_vm3 = vcmp.eq.s32.totalorder %v676_v8, %v1646_v7 }
 0x2e8   :  { %vm708_vm9 = vcmp.eq.s32.totalorder %v1631_v4, %v1649_v16  ;;  %vm712_vm10 = vcmp.eq.s32.totalorder %v674_v10, %v1649_v16  ;;  %vm1210_vm14 = vmpackc.low %vm710_vm8, %vm706_vm7  ;;  %vm720_vm6 = vcmp.eq.s32.totalorder %v676_v8, %v1649_v16  ;;  %vm723_vm8 = vcmp.eq.s32.totalorder %v677_v18, %v1642_v5 }
 0x2e9   :  { %1211 = vmatpush1.bf16.msk.msra.mxu1 %vm1210_vm14, %v1482_v17  ;;  %vm1242_vm1 = vmpackc.low %vm712_vm10, %vm708_vm9  ;;  %vm725_vm10 = vcmp.eq.s32.totalorder %v677_v18, %v1644_v6  ;;  %vm722_vm14 = vcmp.eq.s32.totalorder %v677_v18, %v1646_v7 }
 0x2ea   :  { %1243 = vmatpush1.bf16.msk.msra.mxu0 %vm1242_vm1, %v1482_v17  ;;  %vm724_vm1 = vcmp.eq.s32.totalorder %v677_v18, %v1649_v16 }
 0x2eb   :  { %1424 = vmatmul.mubr.bf16.gmra.mrb[28].mxu0 %v1592_v15  ;;  %v675_v15 = vadd.s32 16, %v1631_v4 }
 0x2ec   :  { %1029 = vmatprep.mubr.bf16.mxu0 %v1483_v30 }
 0x2ed   :  { %vm715_vm12 = vcmp.eq.s32.totalorder %v675_v15, %v1642_v5  ;;  %vm717_vm15 = vcmp.eq.s32.totalorder %v675_v15, %v1644_v6  ;;  %vm714_vm2 = vcmp.eq.s32.totalorder %v675_v15, %v1646_v7  ;;  %vm716_vm5 = vcmp.eq.s32.totalorder %v675_v15, %v1649_v16 }
 0x2ee   :  { %vm1212_vm4 = vmpackc.low %vm719_vm13, %vm715_vm12  ;;  %vm729_vm12 = vcmp.eq.s32.totalorder %v678_v19, %v1644_v6 }
 0x2ef   :  { %1213 = vmatprep.subr.msk.bf16.mxu1 %vm1212_vm4, %v1482_v17  ;;  %vm1244_vm7 = vmpackc.low %vm721_vm0, %vm717_vm15  ;;  %vm726_vm15 = vcmp.eq.s32.totalorder %v678_v19, %v1646_v7  ;;  %vm728_vm4 = vcmp.eq.s32.totalorder %v678_v19, %v1649_v16 }
 0x2f0   :  { %1245 = vmatprep.subr.msk.bf16.mxu0 %vm1244_vm7, %v1482_v17  ;;  %vm1214_vm9 = vmpackc.low %vm718_vm3, %vm714_vm2  ;;  %vm731_vm3 = vcmp.eq.s32.totalorder %v679_v20, %v1642_v5  ;;  %vm735_vm7 = vcmp.eq.s32.totalorder %v680_v21, %v1642_v5 }
 0x2f1   :  { %1215 = vmatpush1.bf16.msk.msra.mxu1 %vm1214_vm9, %v1482_v17  ;;  %vm1246_vm13 = vmpackc.low %vm720_vm6, %vm716_vm5  ;;  %vm733_vm6 = vcmp.eq.s32.totalorder %v679_v20, %v1644_v6  ;;  %vm730_vm9 = vcmp.eq.s32.totalorder %v679_v20, %v1646_v7 }
 0x2f2   :  { %1247 = vmatpush1.bf16.msk.msra.mxu0 %vm1246_vm13, %v1482_v17  ;;  %vm1216_vm0 = vmpackc.low %vm727_vm11, %vm723_vm8  ;;  %vm737_vm8 = vcmp.eq.s32.totalorder %v680_v21, %v1644_v6  ;;  %vm732_vm13 = vcmp.eq.s32.totalorder %v679_v20, %v1649_v16 }
 0x2f3   :  { %1217 = vmatprep.subr.msk.bf16.mxu1 %vm1216_vm0, %v1482_v17  ;;  %vm1248_vm2 = vmpackc.low %vm729_vm12, %vm725_vm10  ;;  %vm734_vm10 = vcmp.eq.s32.totalorder %v680_v21, %v1646_v7  ;;  %vm736_vm0 = vcmp.eq.s32.totalorder %v680_v21, %v1649_v16 }
 0x2f4   :  { %1249 = vmatprep.subr.msk.bf16.mxu0 %vm1248_vm2, %v1482_v17  ;;  %vm1218_vm5 = vmpackc.low %vm726_vm15, %vm722_vm14  ;;  %vm739_vm15 = vcmp.eq.s32.totalorder %v681_v22, %v1642_v5  ;;  %vm743_vm2 = vcmp.eq.s32.totalorder %v682_v23, %v1642_v5 }
 0x2f5   :  { %1219 = vmatpush1.bf16.msk.msra.mxu1 %vm1218_vm5, %v1482_v17  ;;  %vm1250_vm11 = vmpackc.low %vm728_vm4, %vm724_vm1  ;;  %vm741_vm4 = vcmp.eq.s32.totalorder %v681_v22, %v1644_v6  ;;  %vm738_vm5 = vcmp.eq.s32.totalorder %v681_v22, %v1646_v7 }
 0x2f6   :  { %1251 = vmatpush1.bf16.msk.msra.mxu0 %vm1250_vm11, %v1482_v17  ;;  %vm1220_vm12 = vmpackc.low %vm735_vm7, %vm731_vm3  ;;  %vm745_vm3 = vcmp.eq.s32.totalorder %v682_v23, %v1644_v6  ;;  %vm740_vm11 = vcmp.eq.s32.totalorder %v681_v22, %v1649_v16 }
 0x2f7   :  { %1221 = vmatprep.subr.msk.bf16.mxu1 %vm1220_vm12, %v1482_v17  ;;  %vm1252_vm14 = vmpackc.low %vm737_vm8, %vm733_vm6  ;;  %vm742_vm6 = vcmp.eq.s32.totalorder %v682_v23, %v1646_v7  ;;  %vm744_vm12 = vcmp.eq.s32.totalorder %v682_v23, %v1649_v16 }
 0x2f8   :  { %1253 = vmatprep.subr.msk.bf16.mxu0 %vm1252_vm14, %v1482_v17  ;;  %vm1222_vm1 = vmpackc.low %vm734_vm10, %vm730_vm9  ;;  %vm747_vm10 = vcmp.eq.s32.totalorder %v683_v24, %v1642_v5  ;;  %vm751_vm14 = vcmp.eq.s32.totalorder %v684_v25, %v1642_v5 }
 0x2f9   :  { %1223 = vmatpush1.bf16.msk.msra.mxu1 %vm1222_vm1, %v1482_v17  ;;  %vm1254_vm7 = vmpackc.low %vm736_vm0, %vm732_vm13  ;;  %vm749_vm0 = vcmp.eq.s32.totalorder %v683_v24, %v1644_v6  ;;  %vm746_vm1 = vcmp.eq.s32.totalorder %v683_v24, %v1646_v7 }
 0x2fa   :  { %1255 = vmatpush1.bf16.msk.msra.mxu0 %vm1254_vm7, %v1482_v17  ;;  %vm1224_vm8 = vmpackc.low %vm743_vm2, %vm739_vm15  ;;  %vm753_vm15 = vcmp.eq.s32.totalorder %v684_v25, %v1644_v6  ;;  %vm748_vm7 = vcmp.eq.s32.totalorder %v683_v24, %v1649_v16 }
 0x2fb   :  { %1225 = vmatprep.subr.msk.bf16.mxu1 %vm1224_vm8, %v1482_v17  ;;  %vm1256_vm9 = vmpackc.low %vm745_vm3, %vm741_vm4  ;;  %vm750_vm4 = vcmp.eq.s32.totalorder %v684_v25, %v1646_v7  ;;  %vm752_vm8 = vcmp.eq.s32.totalorder %v684_v25, %v1649_v16 }
 0x2fc   :  { %1257 = vmatprep.subr.msk.bf16.mxu0 %vm1256_vm9, %v1482_v17  ;;  %vm1226_vm13 = vmpackc.low %vm742_vm6, %vm738_vm5  ;;  %vm755_vm6 = vcmp.eq.s32.totalorder %v685_v26, %v1642_v5  ;;  %vm759_vm9 = vcmp.eq.s32.totalorder %v686_v27, %v1642_v5 }
 0x2fd   :  { %1227 = vmatpush1.bf16.msk.msra.mxu1 %vm1226_vm13, %v1482_v17  ;;  %vm1258_vm2 = vmpackc.low %vm744_vm12, %vm740_vm11  ;;  %vm757_vm12 = vcmp.eq.s32.totalorder %v685_v26, %v1644_v6  ;;  %vm754_vm13 = vcmp.eq.s32.totalorder %v685_v26, %v1646_v7 }
 0x2fe   :  { %1259 = vmatpush1.bf16.msk.msra.mxu0 %vm1258_vm2, %v1482_v17  ;;  %vm1228_vm3 = vmpackc.low %vm751_vm14, %vm747_vm10  ;;  %vm761_vm10 = vcmp.eq.s32.totalorder %v686_v27, %v1644_v6  ;;  %vm756_vm2 = vcmp.eq.s32.totalorder %v685_v26, %v1649_v16 }
 0x2ff   :  { %1229 = vmatprep.subr.msk.bf16.mxu1 %vm1228_vm3, %v1482_v17  ;;  %vm1260_vm5 = vmpackc.low %vm753_vm15, %vm749_vm0  ;;  %vm758_vm0 = vcmp.eq.s32.totalorder %v686_v27, %v1646_v7  ;;  %vm760_vm3 = vcmp.eq.s32.totalorder %v686_v27, %v1649_v16 }
 0x300   :  { %1261 = vmatprep.subr.msk.bf16.mxu0 %vm1260_vm5, %v1482_v17  ;;  %vm1230_vm11 = vmpackc.low %vm750_vm4, %vm746_vm1  ;;  %vm763_vm4 = vcmp.eq.s32.totalorder %v687_v28, %v1642_v5  ;;  %vm767_vm5 = vcmp.eq.s32.totalorder %v688_v29, %v1642_v5 }
 0x301   :  { %1231 = vmatpush1.bf16.msk.msra.mxu1 %vm1230_vm11, %v1482_v17  ;;  %vm1262_vm14 = vmpackc.low %vm752_vm8, %vm748_vm7  ;;  %vm765_vm8 = vcmp.eq.s32.totalorder %v687_v28, %v1644_v6  ;;  %vm769_vm11 = vcmp.eq.s32.totalorder %v688_v29, %v1644_v6 }
 0x302   :  { %1263 = vmatpush1.bf16.msk.msra.mxu0 %vm1262_vm14, %v1482_v17  ;;  %vm1232_vm15 = vmpackc.low %vm759_vm9, %vm755_vm6  ;;  %vm762_vm9 = vcmp.eq.s32.totalorder %v687_v28, %v1646_v7  ;;  %vm766_vm14 = vcmp.eq.s32.totalorder %v688_v29, %v1646_v7 }
 0x303   :  { %1233 = vmatprep.subr.msk.bf16.mxu1 %vm1232_vm15, %v1482_v17  ;;  %vm1264_vm1 = vmpackc.low %vm761_vm10, %vm757_vm12  ;;  %vm764_vm10 = vcmp.eq.s32.totalorder %v687_v28, %v1649_v16  ;;  %vm768_vm15 = vcmp.eq.s32.totalorder %v688_v29, %v1649_v16 }
 0x304   :  { %1265 = vmatprep.subr.msk.bf16.mxu0 %vm1264_vm1, %v1482_v17  ;;  %vm1234_vm7 = vmpackc.low %vm758_vm0, %vm754_vm13 }
 0x305   :  { %1235 = vmatpush1.bf16.msk.msra.mxu1 %vm1234_vm7, %v1482_v17  ;;  %vm1266_vm6 = vmpackc.low %vm760_vm3, %vm756_vm2  ;;  %vm1090_vm3 = vcmp.lt.s32.totalorder %v672_v3, 256 }
 0x306   :  { %1267 = vmatpush1.bf16.msk.msra.mxu0 %vm1266_vm6, %v1482_v17  ;;  %vm1236_vm12 = vmpackc.low %vm767_vm5, %vm763_vm4 }
 0x307   :  { %1237 = vmatprep.subr.msk.bf16.mxu1 %vm1236_vm12, %v1482_v17  ;;  %vm1268_vm13 = vmpackc.low %vm769_vm11, %vm765_vm8 }
 0x308   :  { %1269 = vmatprep.subr.msk.bf16.mxu0 %vm1268_vm13, %v1482_v17  ;;  %vm1238_vm0 = vmpackc.low %vm766_vm14, %vm762_vm9 }
 0x309   :  { %1239 = vmatpush1.bf16.msk.msra.mxu1 %vm1238_vm0, %v1482_v17  ;;  %vm1270_vm2 = vmpackc.low %vm768_vm15, %vm764_vm10 }
 0x30a   :  { %1271 = vmatpush1.bf16.msk.msra.mxu0 %vm1270_vm2, %v1482_v17 }
 0x3a6   :  { %v1413_v31 = vpop.f32.mrb[16].mxu0 }
 0x3a7   :  { %v609_v33 = vpop.f32.mrb[17].mxu0  ;;  %v618_v35 = vadd.f32 %v1413_v31, %v1143_v32 }
 0x3a8   :  { %v1414_v34 = vpop.f32.mrb[18].mxu0  ;;  %v610_v38 = vadd.f32 %v1143_v32, %v609_v33 }
 0x3a9   :  { %v621_v36 = vadd.f32 %v1414_v34, %v1143_v32  ;;  %v612_v37 = vpop.f32.mrb[19].mxu0 }
 0x3aa   :  { %v613_v39 = vadd.f32 %v1143_v32, %v612_v37 }
 0x3ab   :  { %v931_v40 = vpack.c.bf16 %v621_v36, %v618_v35 }
 0x3ac   :  { %v930_v41 = vpack.c.bf16 %v613_v39, %v610_v38 }
 0x3ae   :  { %v1417_v42 = vpop.f32.mrb[20].mxu0  ;;  %938 = vxpose.xlu0.c.b16.start [1/8] (narrow) %v930_v41, 16 }
 0x3af   :  { %v625_v44 = vpop.f32.mrb[21].mxu0  ;;  %v634_v46 = vadd.f32 %v1417_v42, %v1143_v32 }
 0x3b0   :  { %v1418_v45 = vpop.f32.mrb[22].mxu0  ;;  %v626_v49 = vadd.f32 %v1143_v32, %v625_v44  ;;  %v1484_v44 = vmov 1966171168  }
 0x3b1   :  { %v637_v47 = vadd.f32 %v1418_v45, %v1143_v32  ;;  %v628_v48 = vpop.f32.mrb[23].mxu0  ;;  %v1074_v45 = vunpack.c.l.s4 %v1484_v44 }
 0x3b2   :  { %v629_v50 = vadd.f32 %v1143_v32, %v628_v48  ;;  %939 = vxpose.xlu0.c.b16.cont [2/8] (narrow) %v931_v40, 16 }
 0x3b3   :  { %v933_v43 = vpack.c.bf16 %v637_v47, %v634_v46  ;;  %v1075_v46 = vunpack.c.0.s8 %v1074_v45 }
 0x3b4   :  { %v932_v51 = vpack.c.bf16 %v629_v50, %v626_v49 }
 0x3b5   :  { %v1078_v48 = vsub.s32 %v1075_v46, %v1631_v4 }
 0x3b6   :  { %v1421_v52 = vpop.f32.mrb[24].mxu0  ;;  %940 = vxpose.xlu0.c.b16.cont [3/8] (narrow) %v932_v51, 16 }
 0x3b7   :  { %v641_v53 = vpop.f32.mrb[25].mxu0  ;;  %v650_v55 = vadd.f32 %v1421_v52, %v1143_v32 }
 0x3b8   :  { %v1422_v54 = vpop.f32.mrb[26].mxu0  ;;  %v642_v58 = vadd.f32 %v1143_v32, %v641_v53 }
 0x3b9   :  { %v653_v56 = vadd.f32 %v1422_v54, %v1143_v32  ;;  %v644_v57 = vpop.f32.mrb[27].mxu0 }
 0x3ba   :  { %v645_v59 = vadd.f32 %v1143_v32, %v644_v57  ;;  %941 = vxpose.xlu0.c.b16.cont [4/8] (narrow) %v933_v43, 16 }
 0x3bb   :  { %v935_v60 = vpack.c.bf16 %v653_v56, %v650_v55 }
 0x3bc   :  { %v934_v61 = vpack.c.bf16 %v645_v59, %v642_v58 }
 0x3be   :  { %v1425_v62 = vpop.f32.mrb[28].mxu0  ;;  %942 = vxpose.xlu0.c.b16.cont [5/8] (narrow) %v934_v61, 16 }
 0x3bf   :  { %v657_v63 = vpop.f32.mrb[29].mxu0  ;;  %v666_v1 = vadd.f32 %v1425_v62, %v1143_v32 }
 0x3c0   :  { %v1426_v0 = vpop.f32.mrb[30].mxu0  ;;  %v658_v10 = vadd.f32 %v1143_v32, %v657_v63 }
 0x3c1   :  { %v669_v2 = vadd.f32 %v1426_v0, %v1143_v32  ;;  %v660_v9 = vpop.f32.mrb[31].mxu0 }
 0x3c2   :  { %v661_v11 = vadd.f32 %v1143_v32, %v660_v9  ;;  %943 = vxpose.xlu0.c.b16.cont [6/8] (narrow) %v935_v60, 16 }
 0x3c3   :  { %v937_v12 = vpack.c.bf16 %v669_v2, %v666_v1 }
 0x3c4   :  { %v936_v13 = vpack.c.bf16 %v661_v11, %v658_v10 }
 0x3c6   :  { %944 = vxpose.xlu0.c.b16.cont [7/8] (narrow) %v936_v13, 16 }
 0x3ca   :  { %945 = vxpose.xlu0.c.b16.end [8/8] (narrow) %v937_v12, 16 }
 0x414   :  { %v946_v14 = vpop.trf.xlu0 }
 0x415   :  { %987 = vmatmul.mubr.bf16.vlgmr.msra.gmra.mrb[32].mxu1 %v946_v14  ;;  %1030 = vmatmul.mubr.bf16.vlgmr.msra.gmra.mrb[32].mxu0 %v946_v14 }
 0x4e8   :  { %v988_v15 = vpop.f32.mrb[32].mxu1  ;;  %v1031_v5 = vpop.f32.mrb[32].mxu0 }
 0x4e9   :  { %v1040_v6 = vmul.f32 %v1031_v5, %v988_v15  ;;  %v990_v7 = vpop.f32.mrb[33].mxu1  ;;  %v1033_v8 = vpop.f32.mrb[33].mxu0 }
 0x4ea   :  { %v1041_v16 = vmul.f32 %v1033_v8, %v990_v7  ;;  %v992_v17 = vpop.f32.mrb[34].mxu1  ;;  %v1035_v18 = vpop.f32.mrb[34].mxu0 }
 0x4eb   :  { %v1042_v19 = vmul.f32 %v1035_v18, %v992_v17  ;;  %v994_v20 = vpop.f32.mrb[35].mxu1  ;;  %v1037_v21 = vpop.f32.mrb[35].mxu0 }
 0x4ec   :  { %v1043_v22 = vmul.f32 %v1037_v21, %v994_v20 }
 0x4ed   :  { %v1044_v23 = vadd.f32 %v1042_v19, %v1040_v6 }
 0x4ee   :  { %v1051_v24 = vadd.f32 %v1043_v22, %v1041_v16 }
 0x4ef   :  { %v1045_v25 = vrot.slane %v1044_v23, 4 }
 0x4f0   :  { %v1052_v26 = vrot.slane %v1051_v24, 4 }
 0x4f1   :  { %v1046_v27 = vadd.f32 %v1045_v25, %v1044_v23 }
 0x4f2   :  { %v1053_v28 = vadd.f32 %v1052_v26, %v1051_v24 }
 0x4f3   :  { %v1047_v29 = vrot.slane %v1046_v27, 2 }
 0x4f4   :  { %v1054_v30 = vrot.slane %v1053_v28, 2 }
 0x4f5   :  { %v1048_v31 = vadd.f32 %v1047_v29, %v1046_v27 }
 0x4f6   :  { %v1055_v32 = vadd.f32 %v1054_v30, %v1053_v28 }
 0x4f7   :  { %v1049_v33 = vrot.slane %v1048_v31, 1 }
 0x4f8   :  { %v1056_v34 = vrot.slane %v1055_v32, 1 }
 0x4f9   :  { %v1050_v35 = vadd.f32 %v1049_v33, %v1048_v31 }
 0x4fa   :  { %v1057_v36 = vadd.f32 %v1056_v34, %v1055_v32 }
 0x4fb   :  { %v1272_v37 = vmul.f32 -1.442695, %v1050_v35 }
 0x4fc   :  { %v1273_v38 = vmul.f32 -1.442695, %v1057_v36 }
 0x4fd   :  { %1450 = vpow2.f32 %v1272_v37 }
 0x4fe   :  { %1452 = vpow2.f32 %v1273_v38 }
 0x507   :  { %v1451_v39 = vpop.eup %1450 }
 0x508   :  { %v1453_v40 = vpop.eup %1452  ;;  %v1064_v41 = vadd.f32 1.0, %v1451_v39 }
 0x509   :  { %v1065_v42 = vadd.f32 1.0, %v1453_v40 }
 0x50a   :  { %1454 = vrcp.f32 %v1064_v41 }
 0x50b   :  { %1456 = vrcp.f32 %v1065_v42 }
 0x514   :  { %v1455_v47 = vpop.eup %1454 }
 0x515   :  { %v1457_v49 = vpop.eup %1456 }
 0x516   :  { %v1072_v50 = vcombine.low %v1455_v47, %v1457_v49 }
 0x518   :  { %v1079_v43 = vrot.slane %v1072_v50, %v1078_v48 }
 0x51a   :  { %v1086_v51 = vrot.slane %v1079_v43, %v1078_v48 }
 0x51c   :  { %1092 = vst.msk [vmem:[#allocation2] sm:$0x3] %vm1090_vm3, %v1086_v51 }
 0x51d   :  { %1469 = shalt.err (!%p1466_p4)
}
 0x51e   :  { %s1470_s20 = scalar_lea.hbm %s1787_s7, 32 }
 0x51f   :  { %p1471_p5 = scmp.ne.s32.totalorder %s1787_s7, %s1470_s20  ;;  %p1474_p6 = scmp.lt.u32.totalorder %s1470_s20, %s1787_s7 }
 0x521   :  { %p1476_p7 = pnand %p1474_p6, %p1471_p5 }
 0x523   :  { %1479 = shalt.err (!%p1476_p7)
}
 0x524   :  { %1102 = dma.vmem_to_hbm [thread:$0]  %s1100_s16, 32, %s1787_s7, [#allocation3]  }
 0x525   :  { %1480 = dma.done.wait [#allocation3], 32  }
 0x526   :  { %1481 = vsyncadd [#allocation3], 4294967264 }
 0x527   :  { %1106 = vsyncpa [#allocation3], 1 }

</bundles_post_ra>
